<compile_context>
chip_gen: v5e
topology: v5e:2x2
jax: 0.10.0
libtpu: 0.0.40
codegen_flags: <defaults>
</compile_context>

<pallas_src>
import functools

import jax
import jax.numpy as jnp
from jax.experimental import pallas as pl
from jax.experimental.pallas import tpu as pltpu

LANES = 128


def se_block_kernel(x_ref, w1_ref, b1_ref, w2_ref, b2_ref, o_ref, acc_ref,
                    *, hw_total, thw):
    # x_ref : (tb, C, thw)   native dtype -- one spatial tile of the NCHW input
    # w1_ref: (C, Cr)  f32   -- fc1 weight, pre-transposed for right-matmul
    # b1_ref: (1, Cr)  f32
    # w2_ref: (Cr, C)  f32   -- fc2 weight, pre-transposed
    # b2_ref: (1, C)   f32
    # o_ref : (tb, 1, C)     -- squared sigmoid gate, in the input dtype
    # acc_ref:(tb, C, 128) f32 -- lane-wide partial spatial sums (VMEM scratch)
    k = pl.program_id(1)
    nk = pl.num_programs(1)

    @pl.when(k == 0)
    def _():
        acc_ref[...] = jnp.zeros_like(acc_ref)

    lane_chunked = (thw % LANES == 0)          # trace-time constant
    has_tail = (hw_total % thw != 0)           # trace-time constant
    nchunk = thw // LANES if lane_chunked else 0

    def accumulate_plain():
        if lane_chunked:
            # Lean steady state: aligned 128-lane chunk loads + VPU adds only.
            if nchunk <= 16:
                for i in range(nchunk):        # static unroll (LLO visibility)
                    acc_ref[...] += x_ref[:, :, i * LANES:(i + 1) * LANES].astype(
                        jnp.float32)
            else:
                @pl.loop(0, nchunk)
                def _(i):
                    off = pl.multiple_of(i * LANES, LANES)
                    acc_ref[...] += x_ref[:, :, pl.ds(off, LANES)].astype(
                        jnp.float32)
        else:
            # Single-tile fallback (thw == HW, not a multiple of 128):
            # one cross-lane reduce, executed exactly once per batch tile.
            acc_ref[:, :, 0:1] = acc_ref[:, :, 0:1] + jnp.sum(
                x_ref[...].astype(jnp.float32), axis=-1, keepdims=True)

    if not has_tail:
        accumulate_plain()
    else:
        # Keep the mask OUT of the steady-state loop: plain adds for all tiles
        # except the final (padded) one.
        @pl.when(k != nk - 1)
        def _():
            accumulate_plain()

        @pl.when(k == nk - 1)
        def _():
            x = x_ref[...].astype(jnp.float32)
            lane = jax.lax.broadcasted_iota(jnp.int32, x.shape, dimension=2)
            valid = (k * thw + lane) < hw_total
            x = jnp.where(valid, x, 0.0)
            acc_ref[:, :, 0:1] = acc_ref[:, :, 0:1] + jnp.sum(
                x, axis=-1, keepdims=True)

    @pl.when(k == nk - 1)
    def _():
        # Single cross-lane reduce + tiny FC epilogue, once per batch tile.
        pooled = jnp.sum(acc_ref[...], axis=-1) * (1.0 / hw_total)   # (tb, C)
        h = jnp.dot(pooled, w1_ref[...],
                    preferred_element_type=jnp.float32) + b1_ref[...]
        h = jnp.maximum(h, 0.0)                                      # ReLU
        s = jnp.dot(h, w2_ref[...],
                    preferred_element_type=jnp.float32) + b2_ref[...]
        s = jax.nn.sigmoid(s)
        gate = s * s                                                 # gate**2
        o_ref[...] = gate[:, None, :].astype(o_ref.dtype)


def prepare_se_params(w1, b1, w2, b2):
    """One-time conversion of the 1x1-conv params into the kernel's layout."""
    Cr, C = w1.shape[0], w1.shape[1]
    w1_t = jnp.asarray(w1, jnp.float32).reshape(Cr, C).T   # (C, Cr)
    b1_r = jnp.asarray(b1, jnp.float32).reshape(1, Cr)
    w2_t = jnp.asarray(w2, jnp.float32).reshape(C, Cr).T   # (Cr, C)
    b2_r = jnp.asarray(b2, jnp.float32).reshape(1, C)
    return w1_t, b1_r, w2_t, b2_r


def _vmem_budget_bytes():
    """Generation-aware budget for the kernel's total VMEM footprint."""
    try:
        cap = int(pltpu.get_tpu_info().vmem_capacity_bytes)
    except Exception:
        cap = 64 * 1024 * 1024      # v7x per-TC size: safe lower bound
    # Leave ~1/3 of physical VMEM for the compiler/internal scratch:
    #   v7x (64 MiB) -> ~42 MiB;  v5e/v6e (128 MiB) -> capped at 80 MiB.
    return min((cap * 2) // 3, 80 * 1024 * 1024)


def se_block(x_nchw, w1_t, b1_r, w2_t, b2_r, *, tb=None, thw=None):
    """x_nchw: (B, C, H, W) in its native dtype; params from prepare_se_params."""
    B, C, H, W = x_nchw.shape
    HW = H * W
    Cr = w1_t.shape[1]
    itemsize = jnp.dtype(x_nchw.dtype).itemsize

    # Collapsing contiguous trailing dims: no data movement, no dtype cast.
    x_flat = x_nchw.reshape(B, C, HW)

    # --- tile sizing ---------------------------------------------------------
    budget = _vmem_budget_bytes()
    # Per-buffer x-tile target: 6-12 MiB amortizes the ~0.35 us per-step cost.
    per_tile_cap = min(12 << 20, max(1 << 20, (budget - (5 << 20)) // 2))

    user_tb = tb is not None
    if tb is None:
        # >= 2 batch blocks whenever B >= 2 so v7x's 2nd TensorCore gets work.
        tb = min(8, (B + 1) // 2) if B > 1 else 1
    tb = max(1, min(tb, B))

    if thw is None:
        def max_lanes(t):
            return per_tile_cap // max(1, t * C * itemsize)

        if not user_tb:
            # Prioritize long contiguous spatial runs (thw) over batch rows:
            # shrink tb before letting thw collapse toward 128 lanes.
            while tb > 1 and max_lanes(tb) < min(HW, 4096):
                tb = max(1, tb // 2)

        m = max_lanes(tb)
        if m >= HW:
            thw = HW                                   # single spatial tile
        else:
            thw = max(LANES, (m // LANES) * LANES)
            # Prefer a tile that divides HW evenly (drops the masked tail tile)
            # unless that would shrink the tile by more than 2x.
            if HW % LANES == 0:
                d = thw
                while d >= LANES and HW % d != 0:
                    d -= LANES
                if d >= max(LANES, thw // 2):
                    thw = d
            thw = min(thw, HW)
    assert thw == HW or thw % LANES == 0, "thw must be HW or a multiple of 128"

    nb = pl.cdiv(B, tb)
    nk = pl.cdiv(HW, thw)

    # VMEM footprint -> vmem_limit_bytes (double-buffered x tile dominates).
    tile_bytes = tb * C * thw * itemsize
    acc_bytes = tb * C * LANES * 4
    w_bytes = 4 * (C * Cr + Cr + Cr * C + C)
    out_bytes = tb * C * itemsize
    footprint = 2 * tile_bytes + acc_bytes + 2 * (w_bytes + out_bytes)
    vmem_limit = int(min(budget,
                         max(32 << 20, footprint + footprint // 4 + (2 << 20))))

    kernel = functools.partial(se_block_kernel, hw_total=HW, thw=thw)

    out = pl.pallas_call(
        kernel,
        out_shape=jax.ShapeDtypeStruct((B, 1, C), x_nchw.dtype),
        grid=(nb, nk),
        in_specs=[
            pl.BlockSpec((tb, C, thw), lambda b, k: (b, 0, k)),   # x tile
            pl.BlockSpec((C, Cr), lambda b, k: (0, 0)),           # w1 (tiny)
            pl.BlockSpec((1, Cr), lambda b, k: (0, 0)),           # b1
            pl.BlockSpec((Cr, C), lambda b, k: (0, 0)),           # w2
            pl.BlockSpec((1, C), lambda b, k: (0, 0)),            # b2
        ],
        out_specs=pl.BlockSpec((tb, 1, C), lambda b, k: (b, 0, 0)),
        scratch_shapes=[pltpu.VMEM((tb, C, LANES), jnp.float32)],
        compiler_params=pltpu.CompilerParams(
            dimension_semantics=("parallel", "arbitrary"),
            vmem_limit_bytes=vmem_limit),
    )(x_flat, w1_t, b1_r, w2_t, b2_r)

    # match PyTorch output shape (B, C, 1, 1)
    return out.reshape(B, C, 1, 1)


def se_block_ref(x_nchw, w1, b1, w2, b2):
    """Pure-JAX reference of the PyTorch forward."""
    pooled = jnp.mean(x_nchw.astype(jnp.float32), axis=(2, 3))   # (B, C)
    h = jnp.maximum(pooled @ w1.T + b1, 0.0)                     # (B, Cr)
    s = jax.nn.sigmoid(h @ w2.T + b2)                            # (B, C)
    return (s * s)[:, :, None, None]


if __name__ == "__main__":
    key = jax.random.PRNGKey(0)

    def run_case(case_id, B, C, H, W, reduction, **tile_kwargs):
        Cr = max(1, C // reduction)
        ks = jax.random.split(jax.random.fold_in(key, case_id), 5)
        x = jax.random.normal(ks[0], (B, C, H, W), dtype=jnp.float32)
        w1 = jax.random.normal(ks[1], (Cr, C), dtype=jnp.float32) * 0.1
        b1 = jax.random.normal(ks[2], (Cr,), dtype=jnp.float32) * 0.1
        w2 = jax.random.normal(ks[3], (C, Cr), dtype=jnp.float32) * 0.1
        b2 = jax.random.normal(ks[4], (C,), dtype=jnp.float32) * 0.1

        params = prepare_se_params(w1, b1, w2, b2)   # one-time prep
        out = se_block(x, *params, **tile_kwargs)
        jax.block_until_ready(out)
        ref = se_block_ref(x, w1, b1, w2, b2)
        assert out.shape == (B, C, 1, 1)
        assert jnp.allclose(out, ref, atol=1e-5, rtol=1e-4), \
            f"mismatch in case {case_id}"

    # 1) default tiling: single spatial tile, 2 batch blocks (v7x dual-TC path)
    run_case(1, B=2, C=64, H=16, W=16, reduction=16)
    # 2) multiple spatial tiles, no tail: exercises accumulator + epilogue
    run_case(2, B=2, C=64, H=16, W=16, reduction=16, thw=128)
    # 3) HW not a multiple of the tile -> masked tail tile; also B % tb != 0
    run_case(3, B=3, C=32, H=18, W=18, reduction=8, thw=128)
    # 4) single spatial tile whose width is not a multiple of 128
    run_case(4, B=3, C=32, H=18, W=18, reduction=8)

    print("KERNEL_OK")
</pallas_src>

<mosaic_0001>
module attributes {stable_mosaic.version = 11 : i64} {
  func.func @se_block_kernel(%arg0: i32, %arg1: i32, %arg2: memref<1x64x256xf32, #tpu.memory_space<vmem>>, %arg3: memref<64x4xf32, #tpu.memory_space<vmem>>, %arg4: memref<1x4xf32, #tpu.memory_space<vmem>>, %arg5: memref<4x64xf32, #tpu.memory_space<vmem>>, %arg6: memref<1x64xf32, #tpu.memory_space<vmem>>, %arg7: memref<1x1x64xf32, #tpu.memory_space<vmem>>, %arg8: memref<1x64x128xf32, #tpu.memory_space<vmem>>) attributes {dimension_semantics = [#tpu.dimension_semantics<parallel>, #tpu.dimension_semantics<arbitrary>], iteration_bounds = array<i64: 2, 1>, scalar_prefetch = 0 : i64, scratch_operands = 1 : i64, tpu.core_type = #tpu.core_type<tc>, window_params = [{transform_indices = @transform_0, window_bounds = array<i64: 1, 64, 256>}, {pipeline_mode = #tpu.pipeline_mode<synchronous>, transform_indices = @transform_1, window_bounds = array<i64: 64, 4>}, {pipeline_mode = #tpu.pipeline_mode<synchronous>, transform_indices = @transform_2, window_bounds = array<i64: 1, 4>}, {pipeline_mode = #tpu.pipeline_mode<synchronous>, transform_indices = @transform_3, window_bounds = array<i64: 4, 64>}, {pipeline_mode = #tpu.pipeline_mode<synchronous>, transform_indices = @transform_4, window_bounds = array<i64: 1, 64>}, {transform_indices = @transform_5, window_bounds = array<i64: 1, 1, 64>}]} {
    %c0_i32 = arith.constant 0 : i32
    %0 = arith.cmpi eq, %arg1, %c0_i32 : i32
    %1 = arith.extui %0 : i1 to i32
    %c0_i32_0 = arith.constant 0 : i32
    %2 = arith.cmpi ne, %1, %c0_i32_0 : i32
    scf.if %2 {
      %cst = arith.constant 0.000000e+00 : f32
      %14 = vector.broadcast %cst : f32 to vector<1x64x128xf32>
      %c0_19 = arith.constant 0 : index
      %c0_20 = arith.constant 0 : index
      %c0_21 = arith.constant 0 : index
      %15 = vector.load %arg8[%c0_19, %c0_20, %c0_21] : memref<1x64x128xf32, #tpu.memory_space<vmem>>, vector<1x64x128xf32>
      tpu.vector_store %arg8[%c0_19, %c0_20, %c0_21], %14 {strides = array<i32>} : memref<1x64x128xf32, #tpu.memory_space<vmem>>, vector<1x64x128xf32>,
    } else {
    }
    %c0 = arith.constant 0 : index
    %c0_1 = arith.constant 0 : index
    %c0_2 = arith.constant 0 : index
    %3 = vector.load %arg8[%c0, %c0_1, %c0_2] : memref<1x64x128xf32, #tpu.memory_space<vmem>>, vector<1x64x128xf32>
    %c0_3 = arith.constant 0 : index
    %c0_4 = arith.constant 0 : index
    %c0_5 = arith.constant 0 : index
    %4 = vector.load %arg2[%c0_3, %c0_4, %c0_5] : memref<1x64x256xf32, #tpu.memory_space<vmem>>, vector<1x64x128xf32>
    %5 = arith.addf %3, %4 : vector<1x64x128xf32>
    %c0_6 = arith.constant 0 : index
    %c0_7 = arith.constant 0 : index
    %c0_8 = arith.constant 0 : index
    %6 = vector.load %arg8[%c0_6, %c0_7, %c0_8] : memref<1x64x128xf32, #tpu.memory_space<vmem>>, vector<1x64x128xf32>
    tpu.vector_store %arg8[%c0_6, %c0_7, %c0_8], %5 {strides = array<i32>} : memref<1x64x128xf32, #tpu.memory_space<vmem>>, vector<1x64x128xf32>,
    %c0_9 = arith.constant 0 : index
    %c0_10 = arith.constant 0 : index
    %c0_11 = arith.constant 0 : index
    %7 = vector.load %arg8[%c0_9, %c0_10, %c0_11] : memref<1x64x128xf32, #tpu.memory_space<vmem>>, vector<1x64x128xf32>
    %c0_12 = arith.constant 0 : index
    %c0_13 = arith.constant 0 : index
    %c128 = arith.constant 128 : index
    %8 = vector.load %arg2[%c0_12, %c0_13, %c128] : memref<1x64x256xf32, #tpu.memory_space<vmem>>, vector<1x64x128xf32>
    %9 = arith.addf %7, %8 : vector<1x64x128xf32>
    %c0_14 = arith.constant 0 : index
    %c0_15 = arith.constant 0 : index
    %c0_16 = arith.constant 0 : index
    %10 = vector.load %arg8[%c0_14, %c0_15, %c0_16] : memref<1x64x128xf32, #tpu.memory_space<vmem>>, vector<1x64x128xf32>
    tpu.vector_store %arg8[%c0_14, %c0_15, %c0_16], %9 {strides = array<i32>} : memref<1x64x128xf32, #tpu.memory_space<vmem>>, vector<1x64x128xf32>,
    %c0_i32_17 = arith.constant 0 : i32
    %11 = arith.cmpi eq, %arg1, %c0_i32_17 : i32
    %12 = arith.extui %11 : i1 to i32
    %c0_i32_18 = arith.constant 0 : i32
    %13 = arith.cmpi ne, %12, %c0_i32_18 : i32
    scf.if %13 {
      %c0_19 = arith.constant 0 : index
      %c0_20 = arith.constant 0 : index
      %c0_21 = arith.constant 0 : index
      %14 = vector.load %arg8[%c0_19, %c0_20, %c0_21] : memref<1x64x128xf32, #tpu.memory_space<vmem>>, vector<1x64x128xf32>
      %cst = arith.constant dense<0.000000e+00> : vector<1x64xf32>
      %15 = vector.multi_reduction <add>, %14, %cst [2] : vector<1x64x128xf32> to vector<1x64xf32>
      %cst_22 = arith.constant 3.906250e-03 : f32
      %16 = vector.broadcast %cst_22 : f32 to vector<1x64xf32>
      %17 = arith.mulf %15, %16 : vector<1x64xf32>
      %c0_23 = arith.constant 0 : index
      %c0_24 = arith.constant 0 : index
      %18 = vector.load %arg3[%c0_23, %c0_24] : memref<64x4xf32, #tpu.memory_space<vmem>>, vector<64x4xf32>
      %cst_25 = arith.constant dense<0.000000e+00> : vector<1x4xf32>
      %19 = tpu.matmul %17, %18, %cst_25 {dimension_numbers = #tpu.dot_dimension_numbers<[1], [0], [0], [1], [0, 0, 1, 1], [], []>} : vector<1x64xf32>, vector<64x4xf32>, vector<1x4xf32> -> vector<1x4xf32>
      %c0_26 = arith.constant 0 : index
      %c0_27 = arith.constant 0 : index
      %20 = vector.load %arg4[%c0_26, %c0_27] : memref<1x4xf32, #tpu.memory_space<vmem>>, vector<1x4xf32>
      %21 = arith.addf %19, %20 : vector<1x4xf32>
      %cst_28 = arith.constant 0.000000e+00 : f32
      %22 = vector.broadcast %cst_28 : f32 to vector<1x4xf32>
      %23 = arith.maximumf %21, %22 : vector<1x4xf32>
      %c0_29 = arith.constant 0 : index
      %c0_30 = arith.constant 0 : index
      %24 = vector.load %arg5[%c0_29, %c0_30] : memref<4x64xf32, #tpu.memory_space<vmem>>, vector<4x64xf32>
      %cst_31 = arith.constant dense<0.000000e+00> : vector<1x64xf32>
      %25 = tpu.matmul %23, %24, %cst_31 {dimension_numbers = #tpu.dot_dimension_numbers<[1], [0], [0], [1], [0, 0, 1, 1], [], []>} : vector<1x4xf32>, vector<4x64xf32>, vector<1x64xf32> -> vector<1x64xf32>
      %c0_32 = arith.constant 0 : index
      %c0_33 = arith.constant 0 : index
      %26 = vector.load %arg6[%c0_32, %c0_33] : memref<1x64xf32, #tpu.memory_space<vmem>>, vector<1x64xf32>
      %27 = arith.addf %25, %26 : vector<1x64xf32>
      %28 = arith.negf %27 : vector<1x64xf32>
      %29 = math.exp %28 : vector<1x64xf32>
      %cst_34 = arith.constant 1.000000e+00 : f32
      %30 = vector.broadcast %cst_34 : f32 to vector<1x64xf32>
      %31 = arith.addf %30, %29 : vector<1x64xf32>
      %32 = arith.divf %30, %31 : vector<1x64xf32>
      %33 = arith.mulf %32, %32 : vector<1x64xf32>
      %34 = vector.shape_cast %33 : vector<1x64xf32> to vector<1x1x64xf32>
      %c0_35 = arith.constant 0 : index
      %c0_36 = arith.constant 0 : index
      %c0_37 = arith.constant 0 : index
      %35 = vector.load %arg7[%c0_35, %c0_36, %c0_37] : memref<1x1x64xf32, #tpu.memory_space<vmem>>, vector<1x1x64xf32>
      tpu.vector_store %arg7[%c0_35, %c0_36, %c0_37], %34 {strides = array<i32>} : memref<1x1x64xf32, #tpu.memory_space<vmem>>, vector<1x1x64xf32>,
    } else {
    }
    return
  }
  func.func @transform_0(%arg0: i32, %arg1: i32) -> (i32, i32, i32) {
    %c0_i32 = arith.constant 0 : i32
    %c0_i32_0 = arith.constant 0 : i32
    return %arg0, %c0_i32, %arg1 : i32, i32, i32
  }
  func.func @transform_1(%arg0: i32, %arg1: i32) -> (i32, i32) {
    %c0_i32 = arith.constant 0 : i32
    %c0_i32_0 = arith.constant 0 : i32
    %c0_i32_1 = arith.constant 0 : i32
    return %c0_i32, %c0_i32_0 : i32, i32
  }
  func.func @transform_2(%arg0: i32, %arg1: i32) -> (i32, i32) {
    %c0_i32 = arith.constant 0 : i32
    %c0_i32_0 = arith.constant 0 : i32
    %c0_i32_1 = arith.constant 0 : i32
    return %c0_i32, %c0_i32_0 : i32, i32
  }
  func.func @transform_3(%arg0: i32, %arg1: i32) -> (i32, i32) {
    %c0_i32 = arith.constant 0 : i32
    %c0_i32_0 = arith.constant 0 : i32
    %c0_i32_1 = arith.constant 0 : i32
    return %c0_i32, %c0_i32_0 : i32, i32
  }
  func.func @transform_4(%arg0: i32, %arg1: i32) -> (i32, i32) {
    %c0_i32 = arith.constant 0 : i32
    %c0_i32_0 = arith.constant 0 : i32
    %c0_i32_1 = arith.constant 0 : i32
    return %c0_i32, %c0_i32_0 : i32, i32
  }
  func.func @transform_5(%arg0: i32, %arg1: i32) -> (i32, i32, i32) {
    %c0_i32 = arith.constant 0 : i32
    %c0_i32_0 = arith.constant 0 : i32
    %c0_i32_1 = arith.constant 0 : i32
    return %arg0, %c0_i32, %c0_i32_0 : i32, i32, i32
  }
}

</mosaic_0001>

<bundles_post_ra>
// kernel: tpu_custom_call.1
= control target key start
LH: loop header
LB: loop body
LE: loop exit
PB: predicated region body
PF: predicated region fallthrough
CT: control target
= control target key end

     0   :  { %10 = vsyncpa [#allocation4], 0  ;;  %s970_s0 = inlined_call_operand.hbm [shape: f32[2,64,256], index: 0, kind: input, shape index: {}]   ;;  %s971_s1 = inlined_call_operand.vmem [shape: f32[64,4], index: 1, kind: input, shape index: {}]   ;;  %s972_s2 = inlined_call_operand.vmem [shape: f32[1,4], index: 2, kind: input, shape index: {}]   ;;  %s973_s3 = inlined_call_operand.vmem [shape: f32[4,64], index: 3, kind: input, shape index: {}]   ;;  %s974_s4 = inlined_call_operand.vmem [shape: f32[1,64], index: 4, kind: input, shape index: {}]   ;;  %s975_s5 = inlined_call_operand.hbm [shape: f32[2,1,64], index: 5, kind: output, shape index: {}]  }
   0x1   :  { %12 = vsyncpa [#allocation4 + $0x1], 0 }
   0x2   :  { %13 = vsyncpa [#allocation5], 0 }
   0x3   :  { %15 = vsyncpa [#allocation5 + $0x1], 0  ;;  %s816_s18 = smov 0   ;;  %s818_s19 = smov 0  }
   0x4   :  { %s820_s20 = smov 0   ;;  %s822_s21 = smov 0  }
   0x5   :  { %s824_s22 = smov 0   ;;  %s826_s23 = smov 0  }
   0x6 LB: > { %s586_s24 = sadd.s32 4294967295, %s782_s23   ;;  %s587_s25 = sadd.s32 4294967294, %s782_s23   ;;  %s782_s23 = sphi %s826_s23, %s21_s23   ;;  %s778_s22 = sphi %s824_s22, %s984_s22   ;;  %s774_s21 = sphi %s822_s21, %s983_s21   ;;  %s770_s20 = sphi %s820_s20, %s982_s20   ;;  %s766_s19 = sphi %s818_s19, %s981_s19   ;;  %s762_s18 = sphi %s816_s18, %s980_s18  }
   0x7   : > { %s33_s26 = sadd.s32 1, %s778_s22  ;;  %s42_s27 = sadd.s32 1, %s770_s20 }
   0x8   : > { %p35_p0 = scmp.ge.s32.totalorder %s33_s26, 2  ;;  %p49_p1 = scmp.ne.s32.totalorder %s770_s20, %s766_s19 }
   0x9   : > { %p50_p2 = scmp.eq.s32.totalorder %s782_s23, 0  ;;  %p55_p3 = scmp.ne.s32.totalorder %s766_s19, %s762_s18 }
   0xa   : > { %s986_s26 = smov (%p35_p0, %s33_s26), 0  ;;  %p56_p5 = scmp.eq.s32.totalorder %s586_s24, 0 }
   0xb   : > { %p857_p4 = por %p50_p2, %p49_p1  ;;  %s37_s29 = ssub.s32 %s778_s22, %s986_s26 }
   0xc   : > { %p163_p6 = scmp.eq.s32.totalorder %s586_s24, 1  ;;  %p40_p7 = scmp.eq.s32.totalorder %s37_s29, 0 }
   0xd   : > { %p863_p8 = por %p56_p5, %p55_p3  ;;  %p169_p10 = scmp.eq.s32.totalorder %s587_s25, 1 }
   0xe   : > { %p867_p9 = por %p163_p6, %p49_p1  ;;  %p589_p12 = scmp.ge.s32.totalorder %s782_s23, 2 }
   0xf   : > { %s872_s7 = scalar_select %p40_p7, %s770_s20, %s42_s27  }
  0x10   : > { %p874_p11 = por %p169_p10, %p55_p3  ;;  %p614_p13 = scmp.lt.s32.totalorder %s782_s23, 2 }
  0x11   : > { %s201_s9 = sand.u32 1, %s770_s20   ;;  %s601_s11 = sshll.u32 %s778_s22, 7 }
  0x12   : > { %s590_s10 = sshll.u32 %s201_s9, 7  ;;  %s212_s14 = scalar_lea.hbm %s970_s0, %s601_s11 }
  0x13   : > { %s205_s15 = scalar_lea.vmem [#allocation3], %s590_s10  ;;  %s213_s17 = sshll.u32 %s212_s14, 4  ;;  %s214_s17 = int_to_ptr.hbm [resolvable:$true] %s213_s17 }
  0x14   : > { %s215_s16 = sshll.u32 %s205_s15, 4  ;;  %p607_p0 = pnand %p614_p13, %p857_p4  ;;  %s216_s16 = int_to_ptr.vmem [resolvable:$true] %s215_s16 }
  0x15   : > { %p593_p1 = scmp.ge.s32.totalorder %s782_s23, 1  ;;  %s202_s24 = scalar_lea.sflag [#allocation4], %s201_s9 }
  0x16   : > { %s784_s25 = smov 256   ;;  %s785_s27 = smov 16  }
  0x17   : > { %609 = dma.hbm_to_vmem [thread:$0]  (!%p607_p0), %s214_s17, 2048, %s216_s16, %s202_s24, %s784_s25, %s784_s25, %s785_s27  }
  0x18   : > { %p223_p2 = scmp.lt.s32.totalorder %s782_s23, 3 }
  0x1a   : > { %p224_p3 = pnand %p593_p1, %p223_p2 }
  0x1b   : > { %s890_s29 = sand.u32 (!%p224_p3), 1, %s766_s19  }
  0x1c   : > { %227 = sbr.rel (%p224_p3) target bundleno = 466 (0x1d2), region = 40  ;;  %s594_s10 = sshll.u32 (!%p224_p3), %s890_s29, 7 }
  0x1d   : > { %s230_s11 = scalar_lea.sflag (!%p224_p3), [#allocation4], %s890_s29  ;;  %s233_s12 = scalar_lea.vmem (!%p224_p3), [#allocation3], %s594_s10 }
  0x21   : > { %753 = dma.done.wait (%p863_p8), %s230_s11, 2048  }
  0x22   : > { %755 = vsyncadd (%p863_p8), %s230_s11, 4294965248  ;;  %v281_v0 = vld [vmem:[%s233_s12] sm:$0xff]  ;;  %v313_v1 = vld [vmem:[%s233_s12 + $0x8] sm:$0xff]  ;;  %v389_v32 = vlaneseq  ;;  %vm394_vm0 = vcmask 130112   ;;  %vm398_vm1 = vcmask 195712   ;;  %vm402_vm2 = vcmask 261312   ;;  %s505_s27 = scalar_lea.hbm %s975_s5, %s774_s21 }
  0x23   : > { %v283_v2 = vld [vmem:[%s233_s12 + $0x20] sm:$0xff]  ;;  %v321_v3 = vadd.f32 %v313_v1, %v281_v0  ;;  %v315_v4 = vld [vmem:[%s233_s12 + $0x28] sm:$0xff]  ;;  %v282_v9 = vld [vmem:[%s233_s12 + $0x10] sm:$0xff]  ;;  %vm406_vm3 = vcmask 326912   ;;  %vm410_vm4 = vcmask 392512   ;;  %vm414_vm5 = vcmask 458112  }
  0x24   : > { %v285_v5 = vld [vmem:[%s233_s12 + $0x40] sm:$0xff]  ;;  %v317_v6 = vld [vmem:[%s233_s12 + $0x48] sm:$0xff]  ;;  %v323_v7 = vadd.f32 %v315_v4, %v283_v2  ;;  %v314_v10 = vld [vmem:[%s233_s12 + $0x18] sm:$0xff]  ;;  %v390_v36 = vand.u32 127, %v389_v32  ;;  %vm418_vm6 = vcmask 523712   ;;  %vm420_vm7 = vcmask 523264  }
  0x25   : > { %v325_v8 = vadd.f32 %v317_v6, %v285_v5  ;;  %348 = vadd.xlane.f32.xlu0 %v321_v3  ;;  %v284_v11 = vld [vmem:[%s233_s12 + $0x30] sm:$0xff]  ;;  %v316_v12 = vld [vmem:[%s233_s12 + $0x38] sm:$0xff]  ;;  %v322_v15 = vadd.f32 %v314_v10, %v282_v9  ;;  %v287_v18 = vld [vmem:[%s233_s12 + $0x60] sm:$0xff]  ;;  %vm450_vm8 = vcmask 1043456   ;;  %vm446_vm9 = vcmask 31744   ;;  %s259_s10 = scalar_lea.vmem [#allocation6], %s890_s29 }
  0x26   : > { %352 = vadd.xlane.f32.xlu1 %v323_v7  ;;  %v286_v13 = vld [vmem:[%s233_s12 + $0x50] sm:$0xff]  ;;  %v318_v14 = vld [vmem:[%s233_s12 + $0x58] sm:$0xff]  ;;  %v324_v16 = vadd.f32 %v316_v12, %v284_v11  ;;  %v319_v19 = vld [vmem:[%s233_s12 + $0x68] sm:$0xff]  ;;  %v392_v38 = vadd.s32 4294967288, %v390_v36  ;;  %v396_v39 = vadd.s32 4294967280, %v390_v36  ;;  %v400_v42 = vadd.s32 4294967272, %v390_v36 }
  0x27   : > { %356 = vadd.xlane.f32.xlu2 %v325_v8  ;;  %v326_v17 = vadd.f32 %v318_v14, %v286_v13  ;;  %v288_v20 = vld [vmem:[%s233_s12 + $0x70] sm:$0xff]  ;;  %v320_v21 = vld [vmem:[%s233_s12 + $0x78] sm:$0xff]  ;;  %v327_v22 = vadd.f32 %v319_v19, %v287_v18  ;;  %v377_v26 = vld [vmem:[%s971_s1 + $0x28] sm:$0xff]  ;;  %v404_v46 = vadd.s32 4294967264, %v390_v36  ;;  %v408_v53 = vadd.s32 4294967256, %v390_v36  ;;  %s507_s11 = sshll.u32 %s259_s10, 4  ;;  %s508_s11 = int_to_ptr.vmem [resolvable:$true] %s507_s11 }
  0x28   : > { %v328_v23 = vadd.f32 %v320_v21, %v288_v20  ;;  %v379_v24 = vld [vmem:[%s971_s1 + $0x38] sm:$0xff]  ;;  %v378_v25 = vld [vmem:[%s971_s1 + $0x30] sm:$0xff]  ;;  %v376_v27 = vld [vmem:[%s971_s1 + $0x20] sm:$0xff]  ;;  %v412_v59 = vadd.s32 4294967248, %v390_v36  ;;  %v416_v62 = vadd.s32 4294967240, %v390_v36  ;;  %s509_s12 = sshll.u32 %s505_s27, 4  ;;  %s510_s12 = int_to_ptr.hbm [resolvable:$true] %s509_s12 }
  0x29   : > { %431 = vmatpush.msra.mxu0 %v379_v24  ;;  %v375_v28 = vld [vmem:[%s971_s1 + $0x18] sm:$0xff]  ;;  %v374_v29 = vld [vmem:[%s971_s1 + $0x10] sm:$0xff]  ;;  %v373_v30 = vld [vmem:[%s971_s1 + $0x8] sm:$0xff]  ;;  %vm494_vm14 = vcmask 516096   ;;  %s497_s28 = scalar_lea.sflag [#allocation5], %s890_s29  ;;  %s714_s30 = sshra.s32 %s510_s12, 4  ;;  %s715_s30 = int_to_ptr.hbm [resolvable:$true] %s714_s30 }
  0x2a   : > { %v372_v31 = vld [vmem:[%s971_s1] sm:$0xff]  ;;  %s716_s21 = scalar_lea.hbm %s715_s30, 1  ;;  %s720_s14 = scalar_lea.hbm %s975_s5, 2 }
  0x2b   : > { %432 = vmatpush.msra.mxu0 %v378_v25  ;;  %v444_v8 = vld [vmem:[%s973_s3] sm:$0xf]  ;;  %p717_p4 = scmp.ne.s32.totalorder %s715_s30, %s716_s21  ;;  %p721_p7 = scmp.lt.s32.totalorder %s715_s30, %s975_s5 }
  0x2c   : > { %596 = vmatpush.msk.msra.mxu1 %vm450_vm8, %v444_v8  ;;  %v380_v9 = vld [vmem:[%s972_s2] sm:$0x1]  ;;  %p722_p8 = scmp.lt.s32.totalorder %s720_s14, %s716_s21 }
  0x2d   : > { %350 = vadd.xlane.f32.xlu0 %v322_v15  ;;  %433 = vmatpush.msra.mxu0 %v377_v26  ;;  %v445_v13 = vld [vmem:[%s974_s4] sm:$0x1]  ;;  %p718_p5 = pnand %p717_p4, %p867_p9 }
  0x2e   : > { %354 = vadd.xlane.f32.xlu1 %v324_v16  ;;  %p723_p10 = por %p722_p8, %p721_p7 }
  0x2f   : > { %358 = vadd.xlane.f32.xlu2 %v326_v17  ;;  %434 = vmatpush.msra.mxu0 %v376_v27  ;;  %p719_p6 = pneg %p718_p5 }
  0x31   : > { %435 = vmatpush.msra.mxu0 %v375_v28  ;;  %p724_p13 = pnand %p723_p10, %p719_p6 }
  0x33   : > { %436 = vmatpush.msra.mxu0 %v374_v29 }
  0x35   : > { %360 = vadd.xlane.f32.xlu0 %v327_v22  ;;  %437 = vmatpush.msra.mxu0 %v373_v30 }
  0x36   : > { %362 = vadd.xlane.f32.xlu1 %v328_v23 }
  0x37   : > { %438 = vmatpush.msra.mxu0 %v372_v31 }
  0x98   : > { %v349_v33 = vpop.xlane.xlu0 %348 }
  0x99   : > { %v353_v34 = vpop.xlane.xlu1 %352  ;;  %v364_v37 = vmul.f32 0.00390625, %v349_v33 }
  0x9a   : > { %v357_v35 = vpop.xlane.xlu2 %356  ;;  %v366_v40 = vmul.f32 0.00390625, %v353_v34 }
  0x9b   : > { %v391_v48 = vperm.slane %v364_v37, %v390_v36  ;;  %v368_v49 = vmul.f32 0.00390625, %v357_v35 }
  0x9c   : > { %v397_v51 = vperm.slane %v366_v40, %v396_v39 }
  0x9d   : > { %v405_v57 = vperm.slane %v368_v49, %v404_v46 }
  0xa0   : > { %v351_v41 = vpop.xlane.xlu0 %350 }
  0xa1   : > { %v365_v43 = vmul.f32 0.00390625, %v351_v41  ;;  %v355_v44 = vpop.xlane.xlu1 %354 }
  0xa2   : > { %v359_v45 = vpop.xlane.xlu2 %358  ;;  %v367_v47 = vmul.f32 0.00390625, %v355_v44 }
  0xa3   : > { %v393_v50 = vperm.slane %v365_v43, %v392_v38  ;;  %v369_v54 = vmul.f32 0.00390625, %v359_v45 }
  0xa4   : > { %v401_v52 = vperm.slane %v367_v47, %v400_v42 }
  0xa5   : > { %v395_v55 = vsel %vm394_vm0, %v393_v50, %v391_v48  ;;  %v409_v60 = vperm.slane %v369_v54, %v408_v53 }
  0xa6   : > { %v399_v56 = vsel %vm398_vm1, %v397_v51, %v395_v55 }
  0xa7   : > { %v403_v58 = vsel %vm402_vm2, %v401_v52, %v399_v56 }
  0xa8   : > { %v361_v61 = vpop.xlane.xlu0 %360  ;;  %v407_v1 = vsel %vm406_vm3, %v405_v57, %v403_v58 }
  0xa9   : > { %v370_v63 = vmul.f32 0.00390625, %v361_v61  ;;  %v363_v0 = vpop.xlane.xlu1 %362  ;;  %v411_v5 = vsel %vm410_vm4, %v409_v60, %v407_v1 }
  0xaa   : > { %v371_v2 = vmul.f32 0.00390625, %v363_v0 }
  0xab   : > { %v413_v3 = vperm.slane %v370_v63, %v412_v59 }
  0xac   : > { %v417_v4 = vperm.slane %v371_v2, %v416_v62 }
  0xad   : > { %v415_v6 = vsel %vm414_vm5, %v413_v3, %v411_v5 }
  0xae   : > { %v419_v7 = vsel %vm418_vm6, %v417_v4, %v415_v6 }
  0xaf   : > { %595 = vmatmul.msk.f32.vlgmr.msra.gmra.mxu0 %vm420_vm7, %v419_v7 }
 0x12c   : > { %v440_v10 = vpop.f32.mrf.mxu0 }
 0x12d   : > { %v441_v11 = vadd.f32 %v440_v10, %v380_v9 }
 0x12f   : > { %v443_v12 = vmax.f32 %v441_v11, 0.0 }
 0x131   : > { %597 = vmatmul.msk.f32.vlgmr.msra.gmra.mxu1 %vm446_vm9, %v443_v12 }
 0x1ae   : > { %v471_v14 = vpop.f32.mrf.mxu1 }
 0x1af   : > { %v472_v15 = vadd.f32 %v471_v14, %v445_v13 }
 0x1b1   : > { %v598_v16 = vmul.f32 -1.442695, %v472_v15 }
 0x1b3   : > { %666 = vpow2.f32 %v598_v16 }
 0x1b9   : > { %v667_v17 = vpop.eup %666 }
 0x1ba   : > { %v477_v18 = vadd.f32 1.0, %v667_v17 }
 0x1bc   : > { %668 = vrcp.f32 %v477_v18  ;;  %v489_v22 = vand.u32 2147483648, %v477_v18  ;;  %v487_v24 = vand.u32 2147483647, %v477_v18  ;;  %vm483_vm11 = vweird.f32 %v477_v18 }
 0x1be   : > { %v490_v26 = vor.u32 1.1754944e-38, %v489_v22  ;;  %vm488_vm13 = vcmp.eq.f32.partialorder %v487_v24, 8.507059e+37 }
 0x1c2   : > { %v669_v19 = vpop.eup %668 }
 0x1c3   : > { %v479_v20 = vmul.f32 %v669_v19, %v477_v18  ;;  %vm484_vm10 = vweird.f32 %v669_v19 }
 0x1c4   : > { %vm485_vm12 = vmor %vm483_vm11, %vm484_vm10 }
 0x1c5   : > { %v480_v21 = vsub.f32 1.0, %v479_v20 }
 0x1c7   : > { %v481_v23 = vmul.f32 %v669_v19, %v480_v21 }
 0x1c9   : > { %v482_v25 = vadd.f32 %v669_v19, %v481_v23 }
 0x1cb   : > { %v486_v27 = vsel %vm485_vm12, %v669_v19, %v482_v25 }
 0x1cc   : > { %v491_v28 = vsel %vm488_vm13, %v490_v26, %v486_v27 }
 0x1cd   : > { %v493_v29 = vmul.f32 %v491_v28, %v491_v28 }
 0x1cf   : > { %495 = vst.msk [vmem:[%s259_s10] sm:$0x1] %vm494_vm14, %v493_v29 }
 0x1d0   : > { %727 = shalt.err (!%p724_p13)
}
 0x1d1   : > { %604 = dma.vmem_to_hbm [thread:$0]  (%p867_p9), %s508_s11, 16, %s510_s12, %s497_s28  }
 0x1d2 PF: > { %s521_s29 = sand.u32 1, %s762_s18   ;;  %p611_p0 = pnand %p589_p12, %p874_p11 }
 0x1d3   : > { %s522_s17 = scalar_lea.sflag [#allocation5], %s521_s29 }
 0x1d4   : > { %p612_p1 = pneg %p611_p0 }
 0x1d6   : > { %757 = dma.done.wait (%p612_p1), %s522_s17, 16  }
 0x1d7   : > { %759 = vsyncadd (%p612_p1), %s522_s17, 4294967280  ;;  %s21_s23 = sadd.s32 1, %s782_s23   ;;  %s980_s18 = smov %s766_s19 }
 0x1d8   : > { %p18_p2 = scmp.ge.s32.totalorder %s21_s23, 4   ;;  %s981_s19 = smov %s770_s20 }
 0x1d9   : > { %s982_s20 = smov %s872_s7  ;;  %s983_s21 = smov %s778_s22 }
 0x1da   : > { %s984_s22 = smov %s986_s26  ;;  %20 = sbr.rel (!%p18_p2) target bundleno = 6 (0x6), region = 93 }
 0x1df   :  { %527 = vsyncpa [#allocation4], 1 }
 0x1e0   :  { %529 = vsyncpa [#allocation4 + $0x1], 1 }
 0x1e1   :  { %530 = vsyncpa [#allocation5], 1 }
 0x1e2   :  { %532 = vsyncpa [#allocation5 + $0x1], 1 }

</bundles_post_ra>
